<compile_context>
chip_gen: v7x
topology: tpu7x:2x2x1
jax: 0.10.0
libtpu: 0.0.40
codegen_flags: <defaults>
</compile_context>

<pallas_src>
import functools
import math

import jax
import jax.numpy as jnp
from jax.experimental import pallas as pl
from jax.experimental.pallas import tpu as pltpu


def _mean_vfe_kernel(vox_ref, cnt_ref, s_ref, e_ref, out_ref):
    # vox_ref: (TR, W)    packed voxels, W = K*P*C (lane-dense when K > 1)
    # cnt_ref: (TR, K)    per-voxel point counts
    # s_ref:   (W, K*C)   0/1 summation matrix: sums over the P axis (MXU)
    # e_ref:   (K, K*C)   0/1 expansion matrix: count -> per-column divisor
    # out_ref: (TR, K*C)  packed per-voxel means
    sums = jnp.dot(vox_ref[...], s_ref[...], preferred_element_type=jnp.float32)
    cnt = jnp.maximum(cnt_ref[...].astype(jnp.float32), 1.0)
    if cnt.shape[-1] == 1:
        div = cnt                                  # K == 1: plain lane broadcast
    else:
        div = jnp.dot(cnt, e_ref[...], preferred_element_type=jnp.float32)
    out_ref[...] = (sums / div).astype(out_ref.dtype)


def _lane_pad(n):
    return ((n + 127) // 128) * 128


@functools.partial(jax.jit, static_argnames=("tile_rows",))
def mean_vfe(voxels, voxel_num_points, *, tile_rows=None):
    """voxels: (N, P, C); voxel_num_points: (N,) -> points_mean (N, C)."""
    N, P, C = voxels.shape
    PC = P * C

    # Packing factor: view K consecutive voxels as one lane-dense row of width
    # K*P*C (a multiple of 128) when N allows it; otherwise fall back to K=1.
    K = 128 // math.gcd(PC, 128)
    if K > 1 and N % K != 0:
        # TODO(synk): pad N to a multiple of K upstream to keep lane density.
        K = 1
    R, W = N // K, K * PC

    in_bytes = jnp.dtype(voxels.dtype).itemsize
    cnt_bytes = jnp.dtype(voxel_num_points.dtype).itemsize

    # Per-row VMEM footprint (lane padding included) of vox + cnt + out blocks.
    row_padded = (_lane_pad(W) * in_bytes
                  + _lane_pad(K) * cnt_bytes
                  + _lane_pad(K * C) * in_bytes)

    if tile_rows is not None:
        tile_r = max(8, (tile_rows // 8) * 8)
    else:
        # Double-buffered blocks under a budget safe on every generation
        # (v5e scoped default is 16 MiB -> explicit 32 MiB limit below;
        #  v7x only has 64 MiB physical VMEM).
        budget = 26 * 1024 * 1024
        tile_r = max(8, (budget // (2 * row_padded)) // 8 * 8)
        # v7x megacore: keep >= 2 grid steps when there is enough data.
        if R * row_padded > (2 << 20):
            half_rows = (((R + 1) // 2) + 7) // 8 * 8
            tile_r = min(tile_r, half_rows)
    if tile_r >= R:
        tile_r = R

    grid = (pl.cdiv(R, tile_r),)

    # Constant 0/1 matrices (tiny; compile-time constants under jit).
    rows = jnp.arange(W)
    cols = jnp.arange(K * C)
    summ = ((rows[:, None] // PC == cols[None, :] // C)
            & (rows[:, None] % C == cols[None, :] % C)).astype(voxels.dtype)
    expand = (jnp.arange(K)[:, None] == (cols[None, :] // C)).astype(jnp.float32)

    vox2d = voxels.reshape(R, W)                 # free row-major reshape
    cnt2d = voxel_num_points.reshape(R, K)       # free row-major reshape

    out2d = pl.pallas_call(
        _mean_vfe_kernel,
        out_shape=jax.ShapeDtypeStruct((R, K * C), voxels.dtype),
        grid_spec=pltpu.PrefetchScalarGridSpec(
            num_scalar_prefetch=0,
            grid=grid,
            in_specs=[
                pl.BlockSpec((tile_r, W), lambda i: (i, 0)),
                pl.BlockSpec((tile_r, K), lambda i: (i, 0)),
                pl.BlockSpec((W, K * C), lambda i: (0, 0)),
                pl.BlockSpec((K, K * C), lambda i: (0, 0)),
            ],
            out_specs=pl.BlockSpec((tile_r, K * C), lambda i: (i, 0)),
        ),
        compiler_params=pltpu.CompilerParams(
            dimension_semantics=("parallel",),
            vmem_limit_bytes=32 * 1024 * 1024,
        ),
    )(vox2d, cnt2d, summ, expand)

    return out2d.reshape(N, C)                   # free row-major reshape


def _reference(voxels, voxel_num_points):
    normalizer = jnp.maximum(
        voxel_num_points.astype(jnp.float32), 1.0)[:, None]
    return voxels.sum(axis=1) / normalizer


def _make_case(key, N, P, C):
    kv, kc = jax.random.split(key)
    voxels = jax.random.normal(kv, (N, P, C), dtype=jnp.float32)
    counts = jax.random.randint(kc, (N,), minval=0, maxval=P + 1,
                                dtype=jnp.int32)
    # Zero out padded points beyond the valid count, as in real voxel data.
    valid = jnp.arange(P)[None, :, None] < counts[:, None, None]
    voxels = jnp.where(valid, voxels, 0.0)
    return voxels, counts


if __name__ == "__main__":
    key = jax.random.PRNGKey(0)
    k1, k2, k3 = jax.random.split(key, 3)
    P, C = 8, 4

    # Case 1: packed lane-dense path (K = 4), single-step grid.
    N1 = 512
    vox1, cnt1 = _make_case(k1, N1, P, C)
    out1 = jax.block_until_ready(mean_vfe(vox1, cnt1))
    ref1 = _reference(vox1, cnt1)
    assert out1.shape == (N1, C) and out1.dtype == vox1.dtype
    assert jnp.allclose(out1, ref1, atol=1e-5, rtol=1e-5)

    # Case 2: packed path, multi-step grid with a ragged last tile.
    N2 = 300                                   # R = 75 rows -> tiles 32/32/11
    vox2, cnt2 = _make_case(k2, N2, P, C)
    out2 = jax.block_until_ready(mean_vfe(vox2, cnt2, tile_rows=32))
    ref2 = _reference(vox2, cnt2)
    assert out2.shape == (N2, C)
    assert jnp.allclose(out2, ref2, atol=1e-5, rtol=1e-5)

    # Case 3: K = 1 fallback (N not divisible by the packing factor), ragged.
    N3 = 37
    vox3, cnt3 = _make_case(k3, N3, P, C)
    out3 = jax.block_until_ready(mean_vfe(vox3, cnt3, tile_rows=16))
    ref3 = _reference(vox3, cnt3)
    assert out3.shape == (N3, C)
    assert jnp.allclose(out3, ref3, atol=1e-5, rtol=1e-5)

    print("KERNEL_OK")
</pallas_src>

<mosaic_0001>
module attributes {stable_mosaic.version = 11 : i64} {
  func.func @_mean_vfe_kernel(%arg0: i32, %arg1: memref<128x128xf32, #tpu.memory_space<vmem>>, %arg2: memref<128x4xi32, #tpu.memory_space<vmem>>, %arg3: memref<128x16xf32, #tpu.memory_space<vmem>>, %arg4: memref<4x16xf32, #tpu.memory_space<vmem>>, %arg5: memref<128x16xf32, #tpu.memory_space<vmem>>) attributes {dimension_semantics = [#tpu.dimension_semantics<parallel>], iteration_bounds = array<i64: 1>, scalar_prefetch = 0 : i64, scratch_operands = 0 : i64, tpu.core_type = #tpu.core_type<tc>, window_params = [{transform_indices = @transform_0, window_bounds = array<i64: 128, 128>}, {transform_indices = @transform_1, window_bounds = array<i64: 128, 4>}, {pipeline_mode = #tpu.pipeline_mode<synchronous>, transform_indices = @transform_2, window_bounds = array<i64: 128, 16>}, {pipeline_mode = #tpu.pipeline_mode<synchronous>, transform_indices = @transform_3, window_bounds = array<i64: 4, 16>}, {transform_indices = @transform_4, window_bounds = array<i64: 128, 16>}]} {
    %c0 = arith.constant 0 : index
    %c0_0 = arith.constant 0 : index
    %0 = vector.load %arg1[%c0, %c0_0] : memref<128x128xf32, #tpu.memory_space<vmem>>, vector<128x128xf32>
    %c0_1 = arith.constant 0 : index
    %c0_2 = arith.constant 0 : index
    %1 = vector.load %arg3[%c0_1, %c0_2] : memref<128x16xf32, #tpu.memory_space<vmem>>, vector<128x16xf32>
    %cst = arith.constant dense<0.000000e+00> : vector<128x16xf32>
    %2 = tpu.matmul %0, %1, %cst {dimension_numbers = #tpu.dot_dimension_numbers<[1], [0], [0], [1], [0, 0, 1, 1], [], []>} : vector<128x128xf32>, vector<128x16xf32>, vector<128x16xf32> -> vector<128x16xf32>
    %c0_3 = arith.constant 0 : index
    %c0_4 = arith.constant 0 : index
    %3 = vector.load %arg2[%c0_3, %c0_4] : memref<128x4xi32, #tpu.memory_space<vmem>>, vector<128x4xi32>
    %4 = arith.sitofp %3 : vector<128x4xi32> to vector<128x4xf32>
    %cst_5 = arith.constant 1.000000e+00 : f32
    %5 = vector.broadcast %cst_5 : f32 to vector<128x4xf32>
    %6 = arith.maximumf %4, %5 : vector<128x4xf32>
    %c0_6 = arith.constant 0 : index
    %c0_7 = arith.constant 0 : index
    %7 = vector.load %arg4[%c0_6, %c0_7] : memref<4x16xf32, #tpu.memory_space<vmem>>, vector<4x16xf32>
    %cst_8 = arith.constant dense<0.000000e+00> : vector<128x16xf32>
    %8 = tpu.matmul %6, %7, %cst_8 {dimension_numbers = #tpu.dot_dimension_numbers<[1], [0], [0], [1], [0, 0, 1, 1], [], []>} : vector<128x4xf32>, vector<4x16xf32>, vector<128x16xf32> -> vector<128x16xf32>
    %9 = arith.divf %2, %8 : vector<128x16xf32>
    %c0_9 = arith.constant 0 : index
    %c0_10 = arith.constant 0 : index
    %10 = vector.load %arg5[%c0_9, %c0_10] : memref<128x16xf32, #tpu.memory_space<vmem>>, vector<128x16xf32>
    tpu.vector_store %arg5[%c0_9, %c0_10], %9 {strides = array<i32>} : memref<128x16xf32, #tpu.memory_space<vmem>>, vector<128x16xf32>,
    return
  }
  func.func @transform_0(%arg0: i32) -> (i32, i32) {
    %c0_i32 = arith.constant 0 : i32
    %c0_i32_0 = arith.constant 0 : i32
    return %arg0, %c0_i32 : i32, i32
  }
  func.func @transform_1(%arg0: i32) -> (i32, i32) {
    %c0_i32 = arith.constant 0 : i32
    %c0_i32_0 = arith.constant 0 : i32
    return %arg0, %c0_i32 : i32, i32
  }
  func.func @transform_2(%arg0: i32) -> (i32, i32) {
    %c0_i32 = arith.constant 0 : i32
    %c0_i32_0 = arith.constant 0 : i32
    %c0_i32_1 = arith.constant 0 : i32
    return %c0_i32, %c0_i32_0 : i32, i32
  }
  func.func @transform_3(%arg0: i32) -> (i32, i32) {
    %c0_i32 = arith.constant 0 : i32
    %c0_i32_0 = arith.constant 0 : i32
    %c0_i32_1 = arith.constant 0 : i32
    return %c0_i32, %c0_i32_0 : i32, i32
  }
  func.func @transform_4(%arg0: i32) -> (i32, i32) {
    %c0_i32 = arith.constant 0 : i32
    %c0_i32_0 = arith.constant 0 : i32
    return %arg0, %c0_i32 : i32, i32
  }
}

</mosaic_0001>

<bundles_post_ra>
// kernel: mean_vfe.1
= control target key start
LH: loop header
LB: loop body
LE: loop exit
PB: predicated region body
PF: predicated region fallthrough
CT: control target
= control target key end

     0   :  { %vm292_vm0 = vcmask 1043456   ;;  %vm243_vm1 = vcmask 31744   ;;  %vm473_vm2 = vcmask 130048   ;;  %s958_s2 = inlined_call_operand.vmem [shape: f32[128,16], index: 2, kind: input, shape index: {}]   ;;  %s959_s3 = inlined_call_operand.vmem [shape: f32[4,16], index: 3, kind: input, shape index: {}]   ;;  %s960_s1 = inlined_call_operand.vmem [shape: s32[128,4], index: 1, kind: input, shape index: {}]   ;;  %s961_s0 = inlined_call_operand.vmem [shape: f32[128,128], index: 0, kind: input, shape index: {}]   ;;  %s962_s4 = inlined_call_operand.vmem [shape: f32[128,16], index: 4, kind: output, shape index: {}]  }
   0x1   :  { %v33_v0 = vld [vmem:[%s958_s2] sm:$0xff]  ;;  %v34_v1 = vld [vmem:[%s958_s2 + $0x8] sm:$0xff]  ;;  %v35_v2 = vld [vmem:[%s958_s2 + $0x10] sm:$0xff] }
   0x2   :  { %v642_v3 = vpack.c.bf16 %v34_v1, %v33_v0  ;;  %v36_v4 = vld [vmem:[%s958_s2 + $0x18] sm:$0xff]  ;;  %v37_v6 = vld [vmem:[%s958_s2 + $0x20] sm:$0xff]  ;;  %v38_v7 = vld [vmem:[%s958_s2 + $0x28] sm:$0xff] }
   0x3   :  { %v646_v5 = vpack.c.bf16 %v36_v4, %v35_v2  ;;  %v242_v8 = vld [vmem:[%s959_s3] sm:$0xf]  ;;  %v195_v11 = vld [vmem:[%s960_s1 + $0x8] sm:$0xff]  ;;  %v650_v12 = vpack.c.bf16 %v38_v7, %v37_v6  ;;  %v39_v13 = vld [vmem:[%s958_s2 + $0x30] sm:$0xff] }
   0x4   :  { %643 = vmatprep.subr.bf16.mxu0 %v642_v3  ;;  %v194_v9 = vld [vmem:[%s960_s1] sm:$0xff]  ;;  %616 = vmatprep.subr.msk.mxu1 %vm292_vm0, %v242_v8  ;;  %v211_v14 = vcvt.s32.f32 %v195_v11  ;;  %v196_v15 = vld [vmem:[%s960_s1 + $0x10] sm:$0xff]  ;;  %v40_v16 = vld [vmem:[%s958_s2 + $0x38] sm:$0xff] }
   0x5   :  { %645 = vmatpush3.bf16.msra.mxu0 %v642_v3  ;;  %v210_v10 = vcvt.s32.f32 %v194_v9  ;;  %617 = vmatpush3.msk.msra.mxu1 %vm292_vm0, %v242_v8  ;;  %v212_v18 = vcvt.s32.f32 %v196_v15  ;;  %v197_v19 = vld [vmem:[%s960_s1 + $0x18] sm:$0xff]  ;;  %v198_v20 = vld [vmem:[%s960_s1 + $0x20] sm:$0xff]  ;;  %v199_v24 = vld [vmem:[%s960_s1 + $0x28] sm:$0xff]  ;;  %v654_v28 = vpack.c.bf16 %v40_v16, %v39_v13 }
   0x6   :  { %647 = vmatprep.subr.bf16.mxu0 %v646_v5  ;;  %v227_v21 = vmax.f32 %v211_v14, 1.0  ;;  %v213_v22 = vcvt.s32.f32 %v197_v19  ;;  %v214_v23 = vcvt.s32.f32 %v198_v20  ;;  %v17_v25 = vld [vmem:[%s961_s0] sm:$0xff]  ;;  %v200_v27 = vld [vmem:[%s960_s1 + $0x30] sm:$0xff]  ;;  %v215_v30 = vcvt.s32.f32 %v199_v24  ;;  %v42_v32 = vld [vmem:[%s958_s2 + $0x48] sm:$0xff] }
   0x7   :  { %v226_v17 = vmax.f32 %v210_v10, 1.0  ;;  %v228_v26 = vmax.f32 %v212_v18, 1.0  ;;  %v41_v31 = vld [vmem:[%s958_s2 + $0x40] sm:$0xff]  ;;  %592 = vmatprep.mubr.f32.mxu0 %v17_v25  ;;  %v216_v34 = vcvt.s32.f32 %v200_v27  ;;  %v201_v35 = vld [vmem:[%s960_s1 + $0x38] sm:$0xff]  ;;  %v43_v40 = vld [vmem:[%s958_s2 + $0x50] sm:$0xff] }
   0x8   :  { %v229_v29 = vmax.f32 %v213_v22, 1.0  ;;  %v230_v33 = vmax.f32 %v214_v23, 1.0  ;;  %v202_v36 = vld [vmem:[%s960_s1 + $0x40] sm:$0xff]  ;;  %v658_v37 = vpack.c.bf16 %v42_v32, %v41_v31  ;;  %v231_v38 = vmax.f32 %v215_v30, 1.0  ;;  %v44_v41 = vld [vmem:[%s958_s2 + $0x58] sm:$0xff]  ;;  %v203_v44 = vld [vmem:[%s960_s1 + $0x48] sm:$0xff] }
   0x9   :  { %649 = vmatpush3.bf16.msra.mxu0 %v646_v5  ;;  %618 = vmatprep.mubr.msk.f32.mxu1 %vm243_vm1, %v226_v17  ;;  %v217_v39 = vcvt.s32.f32 %v201_v35  ;;  %v232_v42 = vmax.f32 %v216_v34, 1.0  ;;  %v218_v43 = vcvt.s32.f32 %v202_v36  ;;  %v204_v45 = vld [vmem:[%s960_s1 + $0x50] sm:$0xff]  ;;  %v662_v46 = vpack.c.bf16 %v44_v41, %v43_v40  ;;  %v45_v49 = vld [vmem:[%s958_s2 + $0x60] sm:$0xff]  ;;  %v46_v50 = vld [vmem:[%s958_s2 + $0x68] sm:$0xff] }
   0xa   :  { %651 = vmatprep.subr.bf16.mxu0 %v650_v12  ;;  %619 = vmatmul.mubr.msk.f32.vlgmr.msra.gmra.mrb[0].mxu1 %vm243_vm1, %v227_v21  ;;  %v219_v48 = vcvt.s32.f32 %v203_v44  ;;  %v220_v52 = vcvt.s32.f32 %v204_v45  ;;  %v205_v53 = vld [vmem:[%s960_s1 + $0x58] sm:$0xff]  ;;  %v206_v54 = vld [vmem:[%s960_s1 + $0x60] sm:$0xff]  ;;  %v666_v55 = vpack.c.bf16 %v46_v50, %v45_v49  ;;  %v47_v58 = vld [vmem:[%s958_s2 + $0x70] sm:$0xff] }
   0xb   :  { %621 = vmatprep.mubr.msk.f32.mxu1 %vm243_vm1, %v228_v26  ;;  %v233_v47 = vmax.f32 %v217_v39, 1.0  ;;  %v234_v51 = vmax.f32 %v218_v43, 1.0  ;;  %v221_v57 = vcvt.s32.f32 %v205_v53  ;;  %v48_v59 = vld [vmem:[%s958_s2 + $0x78] sm:$0xff]  ;;  %v222_v61 = vcvt.s32.f32 %v206_v54  ;;  %v207_v62 = vld [vmem:[%s960_s1 + $0x68] sm:$0xff]  ;;  %v208_v63 = vld [vmem:[%s960_s1 + $0x70] sm:$0xff] }
   0xc   :  { %v235_v56 = vmax.f32 %v219_v48, 1.0  ;;  %v236_v60 = vmax.f32 %v220_v52, 1.0  ;;  %v670_v0 = vpack.c.bf16 %v48_v59, %v47_v58  ;;  %v223_v2 = vcvt.s32.f32 %v207_v62  ;;  %v209_v5 = vld [vmem:[%s960_s1 + $0x78] sm:$0xff]  ;;  %v18_v9 = vld [vmem:[%s961_s0 + $0x8] sm:$0xff]  ;;  %v19_v10 = vld [vmem:[%s961_s0 + $0x10] sm:$0xff] }
   0xd   :  { %653 = vmatpush3.bf16.msra.mxu0 %v650_v12  ;;  %v237_v1 = vmax.f32 %v221_v57, 1.0  ;;  %v238_v3 = vmax.f32 %v222_v61, 1.0  ;;  %v224_v4 = vcvt.s32.f32 %v208_v63  ;;  %v225_v7 = vcvt.s32.f32 %v209_v5  ;;  %v20_v12 = vld [vmem:[%s961_s0 + $0x18] sm:$0xff]  ;;  %v21_v13 = vld [vmem:[%s961_s0 + $0x20] sm:$0xff]  ;;  %v22_v14 = vld [vmem:[%s961_s0 + $0x28] sm:$0xff] }
   0xe   :  { %655 = vmatprep.subr.bf16.mxu0 %v654_v28  ;;  %622 = vmatmul.mubr.msk.f32.gmra.mrb[2].mxu1 %vm243_vm1, %v229_v29  ;;  %v239_v6 = vmax.f32 %v223_v2, 1.0  ;;  %v23_v15 = vld [vmem:[%s961_s0 + $0x30] sm:$0xff]  ;;  %v24_v16 = vld [vmem:[%s961_s0 + $0x38] sm:$0xff]  ;;  %v25_v17 = vld [vmem:[%s961_s0 + $0x40] sm:$0xff] }
   0xf   :  { %624 = vmatprep.mubr.msk.f32.mxu1 %vm243_vm1, %v230_v33  ;;  %v240_v8 = vmax.f32 %v224_v4, 1.0  ;;  %v241_v11 = vmax.f32 %v225_v7, 1.0  ;;  %v26_v18 = vld [vmem:[%s961_s0 + $0x48] sm:$0xff]  ;;  %v27_v19 = vld [vmem:[%s961_s0 + $0x50] sm:$0xff]  ;;  %v28_v20 = vld [vmem:[%s961_s0 + $0x58] sm:$0xff] }
  0x10   :  { %v29_v21 = vld [vmem:[%s961_s0 + $0x60] sm:$0xff]  ;;  %v30_v22 = vld [vmem:[%s961_s0 + $0x68] sm:$0xff]  ;;  %v31_v23 = vld [vmem:[%s961_s0 + $0x70] sm:$0xff] }
  0x11   :  { %657 = vmatpush3.bf16.msra.mxu0 %v654_v28  ;;  %v32_v24 = vld [vmem:[%s961_s0 + $0x78] sm:$0xff] }
  0x12   :  { %659 = vmatprep.subr.bf16.mxu0 %v658_v37  ;;  %625 = vmatmul.mubr.msk.f32.gmra.mrb[4].mxu1 %vm243_vm1, %v231_v38 }
  0x13   :  { %627 = vmatprep.mubr.msk.f32.mxu1 %vm243_vm1, %v232_v42 }
  0x15   :  { %661 = vmatpush3.bf16.msra.mxu0 %v658_v37 }
  0x16   :  { %663 = vmatprep.subr.bf16.mxu0 %v662_v46  ;;  %628 = vmatmul.mubr.msk.f32.gmra.mrb[6].mxu1 %vm243_vm1, %v233_v47 }
  0x17   :  { %630 = vmatprep.mubr.msk.f32.mxu1 %vm243_vm1, %v234_v51 }
  0x19   :  { %665 = vmatpush3.bf16.msra.mxu0 %v662_v46 }
  0x1a   :  { %667 = vmatprep.subr.bf16.mxu0 %v666_v55  ;;  %631 = vmatmul.mubr.msk.f32.gmra.mrb[8].mxu1 %vm243_vm1, %v235_v56 }
  0x1b   :  { %633 = vmatprep.mubr.msk.f32.mxu1 %vm243_vm1, %v236_v60 }
  0x1d   :  { %669 = vmatpush3.bf16.msra.mxu0 %v666_v55 }
  0x1e   :  { %671 = vmatprep.subr.bf16.mxu0 %v670_v0  ;;  %634 = vmatmul.mubr.msk.f32.gmra.mrb[10].mxu1 %vm243_vm1, %v237_v1 }
  0x1f   :  { %636 = vmatprep.mubr.msk.f32.mxu1 %vm243_vm1, %v238_v3 }
  0x21   :  { %673 = vmatpush3.bf16.msra.mxu0 %v670_v0 }
  0x22   :  { %637 = vmatmul.mubr.msk.f32.gmra.mrb[12].mxu1 %vm243_vm1, %v239_v6 }
  0x23   :  { %639 = vmatprep.mubr.msk.f32.mxu1 %vm243_vm1, %v240_v8 }
  0x24   :  { %593 = vmatmul.mubr.f32.vlgmr.msra.gmra.mrb[0].mxu0 %v18_v9 }
  0x25   :  { %595 = vmatprep.mubr.f32.mxu0 %v19_v10 }
  0x26   :  { %640 = vmatmul.mubr.msk.f32.gmra.mrb[14].mxu1 %vm243_vm1, %v241_v11 }
  0x28   :  { %596 = vmatmul.mubr.f32.gmra.mrb[2].mxu0 %v20_v12 }
  0x29   :  { %598 = vmatprep.mubr.f32.mxu0 %v21_v13 }
  0x2c   :  { %599 = vmatmul.mubr.f32.gmra.mrb[4].mxu0 %v22_v14 }
  0x2d   :  { %601 = vmatprep.mubr.f32.mxu0 %v23_v15 }
  0x30   :  { %602 = vmatmul.mubr.f32.gmra.mrb[6].mxu0 %v24_v16 }
  0x31   :  { %604 = vmatprep.mubr.f32.mxu0 %v25_v17 }
  0x34   :  { %605 = vmatmul.mubr.f32.gmra.mrb[8].mxu0 %v26_v18 }
  0x35   :  { %607 = vmatprep.mubr.f32.mxu0 %v27_v19 }
  0x38   :  { %608 = vmatmul.mubr.f32.gmra.mrb[10].mxu0 %v28_v20 }
  0x39   :  { %610 = vmatprep.mubr.f32.mxu0 %v29_v21 }
  0x3c   :  { %611 = vmatmul.mubr.f32.gmra.mrb[12].mxu0 %v30_v22 }
  0x3d   :  { %613 = vmatprep.mubr.f32.mxu0 %v31_v23 }
  0x40   :  { %614 = vmatmul.mubr.f32.gmra.mrb[14].mxu0 %v32_v24 }
  0xdd   :  { %v620_v25 = vpop.f32.mrb[0].mxu1 }
  0xde   :  { %v362_v26 = vpop.f32.mrb[1].mxu1  ;;  %674 = vrcp.f32 %v620_v25 }
  0xdf   :  { %676 = vrcp.f32 %v362_v26 }
  0xe1   :  { %v623_v27 = vpop.f32.mrb[2].mxu1 }
  0xe2   :  { %v372_v28 = vpop.f32.mrb[3].mxu1  ;;  %678 = vrcp.f32 %v623_v27 }
  0xe3   :  { %680 = vrcp.f32 %v372_v28 }
  0xe5   :  { %v626_v29 = vpop.f32.mrb[4].mxu1 }
  0xe6   :  { %v382_v30 = vpop.f32.mrb[5].mxu1  ;;  %682 = vrcp.f32 %v626_v29 }
  0xe7   :  { %684 = vrcp.f32 %v382_v30 }
  0xe8   :  { %v675_v37 = vpop.eup %674 }
  0xe9   :  { %v629_v31 = vpop.f32.mrb[6].mxu1  ;;  %v677_v39 = vpop.eup %676 }
  0xea   :  { %v392_v32 = vpop.f32.mrb[7].mxu1  ;;  %686 = vrcp.f32 %v629_v31 }
  0xeb   :  { %688 = vrcp.f32 %v392_v32 }
  0xec   :  { %v679_v44 = vpop.eup %678 }
  0xed   :  { %v632_v33 = vpop.f32.mrb[8].mxu1  ;;  %v681_v47 = vpop.eup %680 }
  0xee   :  { %v402_v34 = vpop.f32.mrb[9].mxu1  ;;  %690 = vrcp.f32 %v632_v33 }
  0xef   :  { %692 = vrcp.f32 %v402_v34 }
  0xf0   :  { %v683_v52 = vpop.eup %682 }
  0xf1   :  { %v635_v35 = vpop.f32.mrb[10].mxu1  ;;  %v685_v54 = vpop.eup %684 }
  0xf2   :  { %v412_v36 = vpop.f32.mrb[11].mxu1  ;;  %694 = vrcp.f32 %v635_v35 }
  0xf3   :  { %696 = vrcp.f32 %v412_v36 }
  0xf4   :  { %v687_v58 = vpop.eup %686 }
  0xf5   :  { %v638_v38 = vpop.f32.mrb[12].mxu1  ;;  %v689_v60 = vpop.eup %688 }
  0xf6   :  { %v422_v40 = vpop.f32.mrb[13].mxu1  ;;  %698 = vrcp.f32 %v638_v38 }
  0xf7   :  { %v594_v41 = vpop.f32.mrb[0].mxu0  ;;  %700 = vrcp.f32 %v422_v40 }
  0xf8   :  { %v444_v42 = vmul.f32 %v675_v37, %v594_v41  ;;  %v115_v43 = vpop.f32.mrb[1].mxu0  ;;  %v691_v0 = vpop.eup %690 }
  0xf9   :  { %v442_v45 = vmul.f32 %v677_v39, %v115_v43  ;;  %v641_v46 = vpop.f32.mrb[14].mxu1  ;;  %v693_v2 = vpop.eup %692 }
  0xfa   :  { %475 = vst.msk [vmem:[%s962_s4 + $0x8] sm:$0xff] %vm473_vm2, %v444_v42  ;;  %v432_v48 = vpop.f32.mrb[15].mxu1  ;;  %702 = vrcp.f32 %v641_v46 }
  0xfb   :  { %474 = vst.msk [vmem:[%s962_s4] sm:$0xff] %vm473_vm2, %v442_v45  ;;  %v597_v49 = vpop.f32.mrb[2].mxu0  ;;  %704 = vrcp.f32 %v432_v48 }
  0xfc   :  { %v448_v50 = vmul.f32 %v679_v44, %v597_v49  ;;  %v125_v51 = vpop.f32.mrb[3].mxu0  ;;  %v695_v6 = vpop.eup %694 }
  0xfd   :  { %v446_v53 = vmul.f32 %v681_v47, %v125_v51  ;;  %v697_v8 = vpop.eup %696 }
  0xfe   :  { %477 = vst.msk [vmem:[%s962_s4 + $0x18] sm:$0xff] %vm473_vm2, %v448_v50 }
  0xff   :  { %476 = vst.msk [vmem:[%s962_s4 + $0x10] sm:$0xff] %vm473_vm2, %v446_v53  ;;  %v600_v55 = vpop.f32.mrb[4].mxu0 }
 0x100   :  { %v452_v56 = vmul.f32 %v683_v52, %v600_v55  ;;  %v135_v57 = vpop.f32.mrb[5].mxu0  ;;  %v699_v12 = vpop.eup %698 }
 0x101   :  { %v450_v59 = vmul.f32 %v685_v54, %v135_v57  ;;  %v701_v14 = vpop.eup %700 }
 0x102   :  { %479 = vst.msk [vmem:[%s962_s4 + $0x28] sm:$0xff] %vm473_vm2, %v452_v56 }
 0x103   :  { %478 = vst.msk [vmem:[%s962_s4 + $0x20] sm:$0xff] %vm473_vm2, %v450_v59  ;;  %v603_v61 = vpop.f32.mrb[6].mxu0 }
 0x104   :  { %v456_v62 = vmul.f32 %v687_v58, %v603_v61  ;;  %v145_v63 = vpop.f32.mrb[7].mxu0  ;;  %v703_v18 = vpop.eup %702 }
 0x105   :  { %v454_v1 = vmul.f32 %v689_v60, %v145_v63  ;;  %v705_v20 = vpop.eup %704 }
 0x106   :  { %481 = vst.msk [vmem:[%s962_s4 + $0x38] sm:$0xff] %vm473_vm2, %v456_v62 }
 0x107   :  { %480 = vst.msk [vmem:[%s962_s4 + $0x30] sm:$0xff] %vm473_vm2, %v454_v1  ;;  %v606_v3 = vpop.f32.mrb[8].mxu0 }
 0x108   :  { %v460_v4 = vmul.f32 %v691_v0, %v606_v3  ;;  %v155_v5 = vpop.f32.mrb[9].mxu0 }
 0x109   :  { %v458_v7 = vmul.f32 %v693_v2, %v155_v5 }
 0x10a   :  { %483 = vst.msk [vmem:[%s962_s4 + $0x48] sm:$0xff] %vm473_vm2, %v460_v4 }
 0x10b   :  { %482 = vst.msk [vmem:[%s962_s4 + $0x40] sm:$0xff] %vm473_vm2, %v458_v7  ;;  %v609_v9 = vpop.f32.mrb[10].mxu0 }
 0x10c   :  { %v464_v10 = vmul.f32 %v695_v6, %v609_v9  ;;  %v165_v11 = vpop.f32.mrb[11].mxu0 }
 0x10d   :  { %v462_v13 = vmul.f32 %v697_v8, %v165_v11 }
 0x10e   :  { %485 = vst.msk [vmem:[%s962_s4 + $0x58] sm:$0xff] %vm473_vm2, %v464_v10 }
 0x10f   :  { %484 = vst.msk [vmem:[%s962_s4 + $0x50] sm:$0xff] %vm473_vm2, %v462_v13  ;;  %v612_v15 = vpop.f32.mrb[12].mxu0 }
 0x110   :  { %v468_v16 = vmul.f32 %v699_v12, %v612_v15  ;;  %v175_v17 = vpop.f32.mrb[13].mxu0 }
 0x111   :  { %v466_v19 = vmul.f32 %v701_v14, %v175_v17 }
 0x112   :  { %487 = vst.msk [vmem:[%s962_s4 + $0x68] sm:$0xff] %vm473_vm2, %v468_v16 }
 0x113   :  { %486 = vst.msk [vmem:[%s962_s4 + $0x60] sm:$0xff] %vm473_vm2, %v466_v19  ;;  %v615_v21 = vpop.f32.mrb[14].mxu0 }
 0x114   :  { %v472_v22 = vmul.f32 %v703_v18, %v615_v21  ;;  %v185_v23 = vpop.f32.mrb[15].mxu0 }
 0x115   :  { %v470_v24 = vmul.f32 %v705_v20, %v185_v23 }
 0x116   :  { %489 = vst.msk [vmem:[%s962_s4 + $0x78] sm:$0xff] %vm473_vm2, %v472_v22 }
 0x117   :  { %488 = vst.msk [vmem:[%s962_s4 + $0x70] sm:$0xff] %vm473_vm2, %v470_v24 }

</bundles_post_ra>
